<compile_context>
chip_gen: v5e
topology: v5e:2x2
jax: 0.10.0
libtpu: 0.0.40
codegen_flags: <defaults>
</compile_context>

<pallas_src>
import functools

import jax
import jax.numpy as jnp
from jax import lax
from jax.experimental import pallas as pl
from jax.experimental.pallas import tpu as pltpu


_LANE = 128


def _round_up(n, m):
    return ((n + m - 1) // m) * m


def _device_kind():
    try:
        return jax.devices()[0].device_kind.lower()
    except Exception:
        return ""


def _vmem_limit(need_bytes, cap_bytes):
    # ~2x the computed footprint as headroom for compiler temporaries; never
    # below the 32 MiB scoped default, never above (most of) physical VMEM.
    return int(min(max(2 * int(need_bytes), 32 * 1024 * 1024), cap_bytes))


# --------------------------- kernel 1: encode --------------------------------
def _encode_kernel(n_valid, e_dtype, approx_recip,
                   x_tile_ref, x_full_ref,
                   w1_ref, b1_ref, w2_ref, b2_ref,
                   w3_ref, b3_ref, w4_ref, b4_ref,
                   xsis_ref, xc_ref, a_ref):
    i = pl.program_id(0)
    cdt = x_tile_ref.dtype                      # MXU input dtype (f32 or bf16)
    tr = x_tile_ref.shape[0]
    n_pad = x_full_ref.shape[0]

    x_t = x_tile_ref[...]                       # (tr, p_in), already compute dtype

    # ---- linear_d: Linear -> ReLU -> Linear -> ReLU (f32 accumulate) ----
    h = jnp.dot(x_t, w1_ref[...], preferred_element_type=jnp.float32) + b1_ref[...]
    h = jnp.maximum(h, 0.0)
    x_sis = jnp.dot(h.astype(cdt), w2_ref[...],
                    preferred_element_type=jnp.float32) + b2_ref[...]
    x_sis = jnp.maximum(x_sis, 0.0)
    xsis_ref[...] = x_sis                       # lane-dense f32 store

    # ---- linear_c: Linear -> ReLU -> Dropout(eval=identity) -> Linear ----
    h2 = jnp.dot(x_sis.astype(cdt), w3_ref[...],
                 preferred_element_type=jnp.float32) + b3_ref[...]
    h2 = jnp.maximum(h2, 0.0)
    xc_ref[...] = jnp.dot(h2.astype(cdt), w4_ref[...],
                          preferred_element_type=jnp.float32) + b4_ref[...]

    # ---- A_hat row tile = softmax(x_tile @ x^T)[cols < n_valid] + I ----
    # dot_general contracts dim 1 of both operands: no XLU transpose.
    s = lax.dot_general(x_t, x_full_ref[...],
                        dimension_numbers=(((1,), (1,)), ((), ())),
                        preferred_element_type=jnp.float32)
    col = lax.broadcasted_iota(jnp.int32, (tr, n_pad), 1)
    # mask padded columns with a large finite negative (exp -> exactly 0, no NaN)
    s = jnp.where(col < n_valid, s, -1e30)
    m = jnp.max(s, axis=-1, keepdims=True)
    e = jnp.exp((s - m).astype(e_dtype))        # bf16 exp on the v6e/v7x fast path
    denom = jnp.sum(e.astype(jnp.float32), axis=-1, keepdims=True)
    # fused normalize + cast: f32 `a` and a separate cast copy are never both live
    a = e * pl.reciprocal(denom, approx=approx_recip).astype(e_dtype)
    row = lax.broadcasted_iota(jnp.int32, (tr, n_pad), 0) + i * tr
    a = jnp.where(row == col, a + 1.0, a)       # fold the "+ I" into A_hat
    a_ref[...] = a.astype(a_ref.dtype)


# ------------------------- kernel 2: GPR propagation -------------------------
def _gpr_prop_kernel(temp_ref, a_ref, xc0_ref, out_ref, xc_a, xc_b):
    k = pl.program_id(0)
    i = pl.program_id(1)
    cdt = a_ref.dtype
    tr = a_ref.shape[0]
    row0 = pl.multiple_of(i * tr, tr)

    # Copy the VMEM-resident initial x_c into the ping buffer exactly once.
    @pl.when((k == 0) & (i == 0))
    def _():
        xc_a[...] = xc0_ref[...]

    a_t = a_ref[...]                            # streamed (tr, N_pad) A_hat row tile

    def step(src_ref, dst_ref):
        # x_{k+1}[tile] = A_hat[tile, :] @ x_k   (identity already folded into A_hat)
        new_t = jnp.dot(a_t, src_ref[...].astype(cdt),
                        preferred_element_type=jnp.float32)
        dst_ref[pl.ds(row0, tr), :] = new_t
        coeff = temp_ref[k + 1]

        @pl.when(k == 0)
        def _():
            out_ref[pl.ds(row0, tr), :] = (
                temp_ref[0] * src_ref[pl.ds(row0, tr), :] + coeff * new_t)

        @pl.when(k > 0)
        def _():
            out_ref[pl.ds(row0, tr), :] = (
                out_ref[pl.ds(row0, tr), :] + coeff * new_t)

    # Ping-pong the full x_c between two VMEM buffers across the K grid steps.
    @pl.when(k % 2 == 0)
    def _():
        step(xc_a, xc_b)

    @pl.when(k % 2 == 1)
    def _():
        step(xc_b, xc_a)


# --------------------------------- wrapper -----------------------------------
def gprgnn_forward(x, params, K, *, compute_dtype=jnp.float32, row_tile=None):
    N, input_dim = x.shape
    hid = params["w1"].shape[1]
    output_dim = params["w4"].shape[1]
    cdt = jnp.dtype(compute_dtype)
    csize = cdt.itemsize

    kind = _device_kind()
    is_v5 = "v5" in kind
    is_v7 = "v7" in kind
    vmem_cap = (56 if is_v7 else 112) * 1024 * 1024   # below physical VMEM

    # bf16 VPU/EUP exists only on v6e/v7x: keep softmax elementwise + reciprocal
    # in f32 on v5e even when the MXU operands are bf16.
    fast_bf16 = (cdt == jnp.dtype(jnp.bfloat16)) and not is_v5
    e_dtype = jnp.bfloat16 if fast_bf16 else jnp.float32
    approx_recip = bool(fast_bf16)

    p_in = _round_up(input_dim, _LANE)
    p_hid = _round_up(hid, _LANE)
    p_out = _round_up(output_dim, _LANE)

    # Row tile: >=256 rows for v6e/v7x (2x256^2 MXU), 128 is enough on v5e.
    if row_tile is None:
        row_tile = 128 if is_v5 else 256
    if N <= 2 * row_tile:
        tr = _round_up(N, 16)            # single row tile for small graphs
    else:
        tr = row_tile
    N_pad = _round_up(N, tr)
    nrows = N_pad // tr

    def pad2(a, r, c):
        return jnp.pad(a, ((0, r - a.shape[0]), (0, c - a.shape[1])))

    x_p = pad2(x, N_pad, p_in).astype(compute_dtype)
    w1 = pad2(params["w1"], p_in, p_hid).astype(compute_dtype)
    w2 = pad2(params["w2"], p_hid, p_in).astype(compute_dtype)
    w3 = pad2(params["w3"], p_in, p_hid).astype(compute_dtype)
    w4 = pad2(params["w4"], p_hid, p_out).astype(compute_dtype)
    b1 = pad2(params["b1"], 1, p_hid)    # biases stay f32 (added post-accumulate)
    b2 = pad2(params["b2"], 1, p_in)
    b3 = pad2(params["b3"], 1, p_hid)
    b4 = pad2(params["b4"], 1, p_out)
    temp = params["temp"].astype(jnp.float32)

    const = lambda shape: pl.BlockSpec(shape, lambda i: (0, 0))

    # ---------------- kernel 1: dense layers + masked softmax ----------------
    k1 = functools.partial(_encode_kernel, N, e_dtype, approx_recip)
    need1 = (2 * tr * p_in * csize                              # x row tile (dbl buf)
             + 2 * N_pad * p_in * csize                         # resident full x
             + 2 * (2 * p_in * p_hid + p_hid * p_in + p_hid * p_out) * csize
             + 2 * 4 * (2 * p_hid + p_in + p_out)               # f32 biases
             + 2 * (tr * p_in * 4 + tr * p_out * 4 + tr * N_pad * csize)  # outputs
             + 4 * tr * N_pad * 4)                              # softmax temporaries
    flops1 = 2 * N_pad * (3 * p_in * p_hid + p_hid * p_out + N_pad * p_in)
    bytes1 = (N_pad * p_in * csize * 2
              + (2 * p_in * p_hid + p_hid * p_in + p_hid * p_out) * csize
              + 4 * (2 * p_hid + p_in + p_out)
              + N_pad * (p_in + p_out) * 4 + N_pad * N_pad * csize)

    x_sis_p, x_c_p, a_hat = pl.pallas_call(
        k1,
        grid=(nrows,),
        in_specs=[
            pl.BlockSpec((tr, p_in), lambda i: (i, 0)),   # x row tile
            const((N_pad, p_in)),                         # full x, VMEM-resident
            const((p_in, p_hid)), const((1, p_hid)),      # weights/biases: DMA once
            const((p_hid, p_in)), const((1, p_in)),
            const((p_in, p_hid)), const((1, p_hid)),
            const((p_hid, p_out)), const((1, p_out)),
        ],
        out_specs=(
            pl.BlockSpec((tr, p_in), lambda i: (i, 0)),
            pl.BlockSpec((tr, p_out), lambda i: (i, 0)),
            pl.BlockSpec((tr, N_pad), lambda i: (i, 0)),
        ),
        out_shape=(
            jax.ShapeDtypeStruct((N_pad, p_in), jnp.float32),
            jax.ShapeDtypeStruct((N_pad, p_out), jnp.float32),
            jax.ShapeDtypeStruct((N_pad, N_pad), compute_dtype),
        ),
        compiler_params=pltpu.CompilerParams(
            dimension_semantics=("parallel",),            # megacore on v7x
            vmem_limit_bytes=_vmem_limit(need1, vmem_cap)),
        cost_estimate=pl.CostEstimate(flops=int(flops1),
                                      transcendentals=int(N_pad * N_pad),
                                      bytes_accessed=int(bytes1)),
    )(x_p, x_p, w1, b1, w2, b2, w3, b3, w4, b4)

    # ---------------- kernel 2: streamed GPR propagation ---------------------
    if K > 0:
        need2 = (3 * tr * N_pad * csize          # streamed A_hat tiles (dbl-buffered DMA)
                 + 2 * N_pad * p_out * 4         # resident x_c0 input
                 + 2 * N_pad * p_out * 4         # resident out accumulator
                 + 2 * N_pad * p_out * 4)        # ping/pong scratch
        flops2 = 2 * K * N_pad * N_pad * p_out
        bytes2 = K * N_pad * N_pad * csize + 3 * N_pad * p_out * 4 + (K + 1) * 4

        out_p = pl.pallas_call(
            _gpr_prop_kernel,
            grid=(K, nrows),
            in_specs=[
                pl.BlockSpec(memory_space=pltpu.MemorySpace.SMEM),       # temp
                pl.BlockSpec((tr, N_pad), lambda k, i: (i, 0)),          # streamed A_hat
                pl.BlockSpec((N_pad, p_out), lambda k, i: (0, 0)),       # x_c0, resident
            ],
            out_specs=pl.BlockSpec((N_pad, p_out), lambda k, i: (0, 0)),  # accumulator
            out_shape=jax.ShapeDtypeStruct((N_pad, p_out), jnp.float32),
            scratch_shapes=[pltpu.VMEM((N_pad, p_out), jnp.float32),
                            pltpu.VMEM((N_pad, p_out), jnp.float32)],
            compiler_params=pltpu.CompilerParams(
                # row axis must stay sequential: each K step reads all row
                # tiles of the previous step from per-core VMEM scratch.
                dimension_semantics=("arbitrary", "arbitrary"),
                vmem_limit_bytes=_vmem_limit(need2, vmem_cap)),
            cost_estimate=pl.CostEstimate(flops=int(flops2), transcendentals=0,
                                          bytes_accessed=int(bytes2)),
        )(temp, a_hat, x_c_p)
        out = out_p[:N, :output_dim]
    else:
        out = temp[0] * x_c_p[:N, :output_dim]

    # Module returns (x, x_sis, out); x is passed through untouched.
    return x, x_sis_p[:N, :input_dim], out


# ------------------------------- params / ref --------------------------------
def init_params(key, K, input_dim, output_dim, alpha=0.1):
    ks = jax.random.split(key, 8)
    d2 = input_dim * 2
    scale = 0.1
    params = {
        "w1": scale * jax.random.normal(ks[0], (input_dim, d2), jnp.float32),
        "b1": scale * jax.random.normal(ks[1], (1, d2), jnp.float32),
        "w2": scale * jax.random.normal(ks[2], (d2, input_dim), jnp.float32),
        "b2": scale * jax.random.normal(ks[3], (1, input_dim), jnp.float32),
        "w3": scale * jax.random.normal(ks[4], (input_dim, d2), jnp.float32),
        "b3": scale * jax.random.normal(ks[5], (1, d2), jnp.float32),
        "w4": scale * jax.random.normal(ks[6], (d2, output_dim), jnp.float32),
        "b4": scale * jax.random.normal(ks[7], (1, output_dim), jnp.float32),
    }
    # GPR_prop.reset_parameters(): temp[k] = alpha*(1-alpha)^k, temp[K] = (1-alpha)^K
    temp = jnp.array(
        [alpha * (1.0 - alpha) ** k for k in range(K)] + [(1.0 - alpha) ** K],
        dtype=jnp.float32)
    params["temp"] = temp
    return params


def _reference(x, params, K):
    h = jnp.maximum(x @ params["w1"] + params["b1"], 0.0)
    x_sis = jnp.maximum(h @ params["w2"] + params["b2"], 0.0)
    h2 = jnp.maximum(x_sis @ params["w3"] + params["b3"], 0.0)
    x_c = h2 @ params["w4"] + params["b4"]
    a_hat = jax.nn.softmax(x @ x.T, axis=-1) + jnp.eye(x.shape[0], dtype=jnp.float32)
    out = params["temp"][0] * x_c
    for k in range(K):
        x_c = a_hat @ x_c
        out = out + params["temp"][k + 1] * x_c
    return x, x_sis, out


if __name__ == "__main__":
    K = 4
    N = 8            # number of nodes
    input_dim = 16
    d_model = 32     # stored but unused in forward (matches the PyTorch module)
    output_dim = 8

    key = jax.random.PRNGKey(0)
    kx, kp = jax.random.split(key)
    x = jax.random.normal(kx, (N, input_dim), jnp.float32)
    params = init_params(kp, K, input_dim, output_dim)

    rx, rsis, rout = _reference(x, params, K)

    # f32 path: exact reciprocal, must match the reference tightly.
    x_out, x_sis, out = gprgnn_forward(x, params, K, compute_dtype=jnp.float32)
    jax.block_until_ready((x_out, x_sis, out))
    assert jnp.allclose(x_out, rx)
    assert jnp.allclose(x_sis, rsis, atol=1e-5, rtol=1e-5)
    assert jnp.allclose(out, rout, atol=1e-5, rtol=1e-5)

    # bf16 MXU-input / f32-accumulate fast path: loose tolerance.
    _, x_sis_bf, out_bf = gprgnn_forward(x, params, K, compute_dtype=jnp.bfloat16)
    jax.block_until_ready((x_sis_bf, out_bf))
    assert jnp.allclose(x_sis_bf, rsis, atol=1e-1, rtol=1e-1)
    assert jnp.allclose(out_bf, rout, atol=1e-1, rtol=1e-1)

    # Larger graph to exercise the multi-row-tile streamed path (row padding,
    # column masking, HBM-streamed A_hat, ping-pong x_c buffers).
    N2 = 600
    x2 = jax.random.normal(jax.random.PRNGKey(1), (N2, input_dim), jnp.float32)
    r2x, r2sis, r2out = _reference(x2, params, K)
    _, x_sis2, out2 = gprgnn_forward(x2, params, K, compute_dtype=jnp.float32)
    jax.block_until_ready((x_sis2, out2))
    assert jnp.allclose(x_sis2, r2sis, atol=1e-3, rtol=1e-3)
    assert jnp.allclose(out2, r2out, atol=1e-3, rtol=1e-3)

    print("KERNEL_OK")
</pallas_src>

<mosaic_0001>
module attributes {stable_mosaic.version = 11 : i64} {
  func.func @_encode_kernel(%arg0: i32, %arg1: memref<16x128xf32, #tpu.memory_space<vmem>>, %arg2: memref<16x128xf32, #tpu.memory_space<vmem>>, %arg3: memref<128x128xf32, #tpu.memory_space<vmem>>, %arg4: memref<1x128xf32, #tpu.memory_space<vmem>>, %arg5: memref<128x128xf32, #tpu.memory_space<vmem>>, %arg6: memref<1x128xf32, #tpu.memory_space<vmem>>, %arg7: memref<128x128xf32, #tpu.memory_space<vmem>>, %arg8: memref<1x128xf32, #tpu.memory_space<vmem>>, %arg9: memref<128x128xf32, #tpu.memory_space<vmem>>, %arg10: memref<1x128xf32, #tpu.memory_space<vmem>>, %arg11: memref<16x128xf32, #tpu.memory_space<vmem>>, %arg12: memref<16x128xf32, #tpu.memory_space<vmem>>, %arg13: memref<16x16xf32, #tpu.memory_space<vmem>>) attributes {dimension_semantics = [#tpu.dimension_semantics<parallel>], iteration_bounds = array<i64: 1>, scalar_prefetch = 0 : i64, scratch_operands = 0 : i64, tpu.core_type = #tpu.core_type<tc>, window_params = [{transform_indices = @transform_0, window_bounds = array<i64: 16, 128>}, {pipeline_mode = #tpu.pipeline_mode<synchronous>, transform_indices = @transform_1, window_bounds = array<i64: 16, 128>}, {pipeline_mode = #tpu.pipeline_mode<synchronous>, transform_indices = @transform_2, window_bounds = array<i64: 128, 128>}, {pipeline_mode = #tpu.pipeline_mode<synchronous>, transform_indices = @transform_3, window_bounds = array<i64: 1, 128>}, {pipeline_mode = #tpu.pipeline_mode<synchronous>, transform_indices = @transform_4, window_bounds = array<i64: 128, 128>}, {pipeline_mode = #tpu.pipeline_mode<synchronous>, transform_indices = @transform_5, window_bounds = array<i64: 1, 128>}, {pipeline_mode = #tpu.pipeline_mode<synchronous>, transform_indices = @transform_6, window_bounds = array<i64: 128, 128>}, {pipeline_mode = #tpu.pipeline_mode<synchronous>, transform_indices = @transform_7, window_bounds = array<i64: 1, 128>}, {pipeline_mode = #tpu.pipeline_mode<synchronous>, transform_indices = @transform_8, window_bounds = array<i64: 128, 128>}, {pipeline_mode = #tpu.pipeline_mode<synchronous>, transform_indices = @transform_9, window_bounds = array<i64: 1, 128>}, {transform_indices = @transform_10, window_bounds = array<i64: 16, 128>}, {transform_indices = @transform_11, window_bounds = array<i64: 16, 128>}, {transform_indices = @transform_12, window_bounds = array<i64: 16, 16>}]} {
    %c0 = arith.constant 0 : index
    %c0_0 = arith.constant 0 : index
    %0 = vector.load %arg1[%c0, %c0_0] : memref<16x128xf32, #tpu.memory_space<vmem>>, vector<16x128xf32>
    %c0_1 = arith.constant 0 : index
    %c0_2 = arith.constant 0 : index
    %1 = vector.load %arg3[%c0_1, %c0_2] : memref<128x128xf32, #tpu.memory_space<vmem>>, vector<128x128xf32>
    %cst = arith.constant dense<0.000000e+00> : vector<16x128xf32>
    %2 = tpu.matmul %0, %1, %cst {dimension_numbers = #tpu.dot_dimension_numbers<[1], [0], [0], [1], [0, 0, 1, 1], [], []>} : vector<16x128xf32>, vector<128x128xf32>, vector<16x128xf32> -> vector<16x128xf32>
    %c0_3 = arith.constant 0 : index
    %c0_4 = arith.constant 0 : index
    %3 = vector.load %arg4[%c0_3, %c0_4] : memref<1x128xf32, #tpu.memory_space<vmem>>, vector<1x128xf32>
    %4 = vector.broadcast %3 : vector<1x128xf32> to vector<16x128xf32>
    %5 = arith.addf %2, %4 : vector<16x128xf32>
    %cst_5 = arith.constant 0.000000e+00 : f32
    %6 = vector.broadcast %cst_5 : f32 to vector<16x128xf32>
    %7 = arith.maximumf %5, %6 : vector<16x128xf32>
    %c0_6 = arith.constant 0 : index
    %c0_7 = arith.constant 0 : index
    %8 = vector.load %arg5[%c0_6, %c0_7] : memref<128x128xf32, #tpu.memory_space<vmem>>, vector<128x128xf32>
    %cst_8 = arith.constant dense<0.000000e+00> : vector<16x128xf32>
    %9 = tpu.matmul %7, %8, %cst_8 {dimension_numbers = #tpu.dot_dimension_numbers<[1], [0], [0], [1], [0, 0, 1, 1], [], []>} : vector<16x128xf32>, vector<128x128xf32>, vector<16x128xf32> -> vector<16x128xf32>
    %c0_9 = arith.constant 0 : index
    %c0_10 = arith.constant 0 : index
    %10 = vector.load %arg6[%c0_9, %c0_10] : memref<1x128xf32, #tpu.memory_space<vmem>>, vector<1x128xf32>
    %11 = vector.broadcast %10 : vector<1x128xf32> to vector<16x128xf32>
    %12 = arith.addf %9, %11 : vector<16x128xf32>
    %cst_11 = arith.constant 0.000000e+00 : f32
    %13 = vector.broadcast %cst_11 : f32 to vector<16x128xf32>
    %14 = arith.maximumf %12, %13 : vector<16x128xf32>
    %c0_12 = arith.constant 0 : index
    %c0_13 = arith.constant 0 : index
    %15 = vector.load %arg11[%c0_12, %c0_13] : memref<16x128xf32, #tpu.memory_space<vmem>>, vector<16x128xf32>
    tpu.vector_store %arg11[%c0_12, %c0_13], %14 {strides = array<i32>} : memref<16x128xf32, #tpu.memory_space<vmem>>, vector<16x128xf32>,
    %c0_14 = arith.constant 0 : index
    %c0_15 = arith.constant 0 : index
    %16 = vector.load %arg7[%c0_14, %c0_15] : memref<128x128xf32, #tpu.memory_space<vmem>>, vector<128x128xf32>
    %cst_16 = arith.constant dense<0.000000e+00> : vector<16x128xf32>
    %17 = tpu.matmul %14, %16, %cst_16 {dimension_numbers = #tpu.dot_dimension_numbers<[1], [0], [0], [1], [0, 0, 1, 1], [], []>} : vector<16x128xf32>, vector<128x128xf32>, vector<16x128xf32> -> vector<16x128xf32>
    %c0_17 = arith.constant 0 : index
    %c0_18 = arith.constant 0 : index
    %18 = vector.load %arg8[%c0_17, %c0_18] : memref<1x128xf32, #tpu.memory_space<vmem>>, vector<1x128xf32>
    %19 = vector.broadcast %18 : vector<1x128xf32> to vector<16x128xf32>
    %20 = arith.addf %17, %19 : vector<16x128xf32>
    %cst_19 = arith.constant 0.000000e+00 : f32
    %21 = vector.broadcast %cst_19 : f32 to vector<16x128xf32>
    %22 = arith.maximumf %20, %21 : vector<16x128xf32>
    %c0_20 = arith.constant 0 : index
    %c0_21 = arith.constant 0 : index
    %23 = vector.load %arg9[%c0_20, %c0_21] : memref<128x128xf32, #tpu.memory_space<vmem>>, vector<128x128xf32>
    %cst_22 = arith.constant dense<0.000000e+00> : vector<16x128xf32>
    %24 = tpu.matmul %22, %23, %cst_22 {dimension_numbers = #tpu.dot_dimension_numbers<[1], [0], [0], [1], [0, 0, 1, 1], [], []>} : vector<16x128xf32>, vector<128x128xf32>, vector<16x128xf32> -> vector<16x128xf32>
    %c0_23 = arith.constant 0 : index
    %c0_24 = arith.constant 0 : index
    %25 = vector.load %arg10[%c0_23, %c0_24] : memref<1x128xf32, #tpu.memory_space<vmem>>, vector<1x128xf32>
    %26 = vector.broadcast %25 : vector<1x128xf32> to vector<16x128xf32>
    %27 = arith.addf %24, %26 : vector<16x128xf32>
    %c0_25 = arith.constant 0 : index
    %c0_26 = arith.constant 0 : index
    %28 = vector.load %arg12[%c0_25, %c0_26] : memref<16x128xf32, #tpu.memory_space<vmem>>, vector<16x128xf32>
    tpu.vector_store %arg12[%c0_25, %c0_26], %27 {strides = array<i32>} : memref<16x128xf32, #tpu.memory_space<vmem>>, vector<16x128xf32>,
    %c0_27 = arith.constant 0 : index
    %c0_28 = arith.constant 0 : index
    %29 = vector.load %arg2[%c0_27, %c0_28] : memref<16x128xf32, #tpu.memory_space<vmem>>, vector<16x128xf32>
    %cst_29 = arith.constant dense<0.000000e+00> : vector<16x16xf32>
    %30 = tpu.matmul %0, %29, %cst_29 {dimension_numbers = #tpu.dot_dimension_numbers<[1], [1], [0], [0], [0, 0, 1, 0], [], []>} : vector<16x128xf32>, vector<16x128xf32>, vector<16x16xf32> -> vector<16x16xf32>
    %31 = tpu.iota {dimensions = array<i32: 1>} : vector<16x16xi32>
    %c8_i32 = arith.constant 8 : i32
    %32 = vector.broadcast %c8_i32 : i32 to vector<16x16xi32>
    %33 = arith.cmpi slt, %31, %32 : vector<16x16xi32>
    %cst_30 = arith.constant -1.000000e+30 : f32
    %34 = vector.broadcast %cst_30 : f32 to vector<16x16xf32>
    %35 = arith.select %33, %30, %34 : vector<16x16xi1>, vector<16x16xf32>
    %cst_31 = arith.constant dense<0xFF800000> : vector<16xf32>
    %36 = vector.multi_reduction <maximumf>, %35, %cst_31 [1] : vector<16x16xf32> to vector<16xf32>
    %37 = vector.shape_cast %36 : vector<16xf32> to vector<16x1xf32>
    %38 = vector.broadcast %37 : vector<16x1xf32> to vector<16x16xf32>
    %39 = arith.subf %35, %38 : vector<16x16xf32>
    %40 = math.exp %39 : vector<16x16xf32>
    %cst_32 = arith.constant dense<0.000000e+00> : vector<16xf32>
    %41 = vector.multi_reduction <add>, %40, %cst_32 [1] : vector<16x16xf32> to vector<16xf32>
    %42 = vector.shape_cast %41 : vector<16xf32> to vector<16x1xf32>
    %43 = tpu.reciprocal %42 : vector<16x1xf32> -> vector<16x1xf32>
    %44 = vector.broadcast %43 : vector<16x1xf32> to vector<16x16xf32>
    %45 = arith.mulf %40, %44 : vector<16x16xf32>
    %46 = tpu.iota {dimensions = array<i32: 0>} : vector<16x16xi32>
    %c16_i32 = arith.constant 16 : i32
    %47 = arith.muli %arg0, %c16_i32 : i32
    %48 = vector.broadcast %47 : i32 to vector<16x16xi32>
    %49 = arith.addi %46, %48 : vector<16x16xi32>
    %50 = arith.cmpi eq, %49, %31 : vector<16x16xi32>
    %cst_33 = arith.constant 1.000000e+00 : f32
    %51 = vector.broadcast %cst_33 : f32 to vector<16x16xf32>
    %52 = arith.addf %45, %51 : vector<16x16xf32>
    %53 = arith.select %50, %52, %45 : vector<16x16xi1>, vector<16x16xf32>
    %c0_34 = arith.constant 0 : index
    %c0_35 = arith.constant 0 : index
    %54 = vector.load %arg13[%c0_34, %c0_35] : memref<16x16xf32, #tpu.memory_space<vmem>>, vector<16x16xf32>
    tpu.vector_store %arg13[%c0_34, %c0_35], %53 {strides = array<i32>} : memref<16x16xf32, #tpu.memory_space<vmem>>, vector<16x16xf32>,
    return
  }
  func.func @transform_0(%arg0: i32) -> (i32, i32) {
    %c0_i32 = arith.constant 0 : i32
    %c0_i32_0 = arith.constant 0 : i32
    return %arg0, %c0_i32 : i32, i32
  }
  func.func @transform_1(%arg0: i32) -> (i32, i32) {
    %c0_i32 = arith.constant 0 : i32
    %c0_i32_0 = arith.constant 0 : i32
    %c0_i32_1 = arith.constant 0 : i32
    return %c0_i32, %c0_i32_0 : i32, i32
  }
  func.func @transform_2(%arg0: i32) -> (i32, i32) {
    %c0_i32 = arith.constant 0 : i32
    %c0_i32_0 = arith.constant 0 : i32
    %c0_i32_1 = arith.constant 0 : i32
    return %c0_i32, %c0_i32_0 : i32, i32
  }
  func.func @transform_3(%arg0: i32) -> (i32, i32) {
    %c0_i32 = arith.constant 0 : i32
    %c0_i32_0 = arith.constant 0 : i32
    %c0_i32_1 = arith.constant 0 : i32
    return %c0_i32, %c0_i32_0 : i32, i32
  }
  func.func @transform_4(%arg0: i32) -> (i32, i32) {
    %c0_i32 = arith.constant 0 : i32
    %c0_i32_0 = arith.constant 0 : i32
    %c0_i32_1 = arith.constant 0 : i32
    return %c0_i32, %c0_i32_0 : i32, i32
  }
  func.func @transform_5(%arg0: i32) -> (i32, i32) {
    %c0_i32 = arith.constant 0 : i32
    %c0_i32_0 = arith.constant 0 : i32
    %c0_i32_1 = arith.constant 0 : i32
    return %c0_i32, %c0_i32_0 : i32, i32
  }
  func.func @transform_6(%arg0: i32) -> (i32, i32) {
    %c0_i32 = arith.constant 0 : i32
    %c0_i32_0 = arith.constant 0 : i32
    %c0_i32_1 = arith.constant 0 : i32
    return %c0_i32, %c0_i32_0 : i32, i32
  }
  func.func @transform_7(%arg0: i32) -> (i32, i32) {
    %c0_i32 = arith.constant 0 : i32
    %c0_i32_0 = arith.constant 0 : i32
    %c0_i32_1 = arith.constant 0 : i32
    return %c0_i32, %c0_i32_0 : i32, i32
  }
  func.func @transform_8(%arg0: i32) -> (i32, i32) {
    %c0_i32 = arith.constant 0 : i32
    %c0_i32_0 = arith.constant 0 : i32
    %c0_i32_1 = arith.constant 0 : i32
    return %c0_i32, %c0_i32_0 : i32, i32
  }
  func.func @transform_9(%arg0: i32) -> (i32, i32) {
    %c0_i32 = arith.constant 0 : i32
    %c0_i32_0 = arith.constant 0 : i32
    %c0_i32_1 = arith.constant 0 : i32
    return %c0_i32, %c0_i32_0 : i32, i32
  }
  func.func @transform_10(%arg0: i32) -> (i32, i32) {
    %c0_i32 = arith.constant 0 : i32
    %c0_i32_0 = arith.constant 0 : i32
    return %arg0, %c0_i32 : i32, i32
  }
  func.func @transform_11(%arg0: i32) -> (i32, i32) {
    %c0_i32 = arith.constant 0 : i32
    %c0_i32_0 = arith.constant 0 : i32
    return %arg0, %c0_i32 : i32, i32
  }
  func.func @transform_12(%arg0: i32) -> (i32, i32) {
    %c0_i32 = arith.constant 0 : i32
    %c0_i32_0 = arith.constant 0 : i32
    return %arg0, %c0_i32 : i32, i32
  }
}

</mosaic_0001>

<bundles_post_ra>
// kernel: tpu_custom_call.1
= control target key start
LH: loop header
LB: loop body
LE: loop exit
PB: predicated region body
PF: predicated region fallthrough
CT: control target
= control target key end

     0   :  { %18 = vsyncpa [#allocation3], 0  ;;  %s892_s0 = inlined_call_operand.hbm [shape: f32[16,128], index: 0, kind: input, shape index: {}]   ;;  %s893_s1 = inlined_call_operand.hbm [shape: f32[16,128], index: 1, kind: input, shape index: {}]   ;;  %s894_s2 = inlined_call_operand.hbm [shape: f32[128,128], index: 2, kind: input, shape index: {}]   ;;  %s895_s3 = inlined_call_operand.vmem [shape: f32[1,128], index: 3, kind: input, shape index: {}]   ;;  %s896_s4 = inlined_call_operand.hbm [shape: f32[128,128], index: 4, kind: input, shape index: {}]   ;;  %s897_s5 = inlined_call_operand.vmem [shape: f32[1,128], index: 5, kind: input, shape index: {}]   ;;  %s898_s6 = inlined_call_operand.hbm [shape: f32[128,128], index: 6, kind: input, shape index: {}]   ;;  %s899_s7 = inlined_call_operand.vmem [shape: f32[1,128], index: 7, kind: input, shape index: {}]   ;;  %s900_s8 = inlined_call_operand.hbm [shape: f32[128,128], index: 8, kind: input, shape index: {}]   ;;  %s901_s9 = inlined_call_operand.vmem [shape: f32[1,128], index: 9, kind: input, shape index: {}]   ;;  %s902_s10 = inlined_call_operand.hbm [shape: f32[16,128], index: 10, kind: output, shape index: {0}]   ;;  %s903_s11 = inlined_call_operand.hbm [shape: f32[16,128], index: 11, kind: output, shape index: {1}]   ;;  %s904_s12 = inlined_call_operand.hbm [shape: f32[16,16], index: 12, kind: output, shape index: {2}]  }
   0x1   :  { %19 = vsyncpa [#allocation6], 0 }
   0x2   :  { %20 = vsyncpa [#allocation9], 0 }
   0x3   :  { %21 = vsyncpa [#allocation12], 0 }
   0x4   :  { %22 = vsyncpa [#allocation4], 0 }
   0x5   :  { %23 = vsyncpa [#allocation15], 0  ;;  %s41_s23 = sshll.u32 %s893_s1, 4  ;;  %s722_s24 = smov [#allocation5]   ;;  %s42_s23 = int_to_ptr.hbm [resolvable:$true] %s41_s23 }
   0x6   :  { %s43_s25 = sshll.u32 %s722_s24, 4  ;;  %s69_s28 = sshll.u32 %s896_s4, 4  ;;  %s44_s25 = int_to_ptr.vmem [resolvable:$true] %s43_s25  ;;  %s70_s28 = int_to_ptr.hbm [resolvable:$true] %s69_s28 }
   0x7   :  { %s723_s29 = smov 128   ;;  %s724_s30 = smov 8  }
   0x8   :  { %49 = dma.hbm_to_vmem [thread:$0]  %s42_s23, 256, %s44_s25, [#allocation6], %s723_s29, %s723_s29, %s724_s30  }
   0x9   :  { %s725_s13 = smov [#allocation8]   ;;  %s28_s1 = sshll.u32 %s892_s0, 4  ;;  %s29_s1 = int_to_ptr.hbm [resolvable:$true] %s28_s1 }
   0xa   :  { %s71_s14 = sshll.u32 %s725_s13, 4  ;;  %s54_s18 = sshll.u32 %s894_s2, 4  ;;  %s72_s14 = int_to_ptr.vmem [resolvable:$true] %s71_s14  ;;  %s55_s18 = int_to_ptr.hbm [resolvable:$true] %s54_s18 }
   0xb   :  { %77 = dma.hbm_to_vmem [thread:$0]  %s70_s28, 2048, %s72_s14, [#allocation9], %s723_s29, %s723_s29, %s724_s30  }
   0xc   :  { %s726_s19 = smov [#allocation2]   ;;  %s727_s21 = smov [#allocation7]  }
   0xd   :  { %s30_s20 = sshll.u32 %s726_s19, 4  ;;  %s56_s0 = sshll.u32 %s727_s21, 4  ;;  %s31_s20 = int_to_ptr.vmem [resolvable:$true] %s30_s20  ;;  %s57_s0 = int_to_ptr.vmem [resolvable:$true] %s56_s0 }
   0xe   :  { %36 = dma.hbm_to_vmem [thread:$0]  %s29_s1, 256, %s31_s20, [#allocation3], %s723_s29, %s723_s29, %s724_s30  }
   0xf   :  { %s84_s24 = sshll.u32 %s898_s6, 4  ;;  %s99_s26 = sshll.u32 %s900_s8, 4  ;;  %s85_s24 = int_to_ptr.hbm [resolvable:$true] %s84_s24  ;;  %s100_s26 = int_to_ptr.hbm [resolvable:$true] %s99_s26 }
  0x10   :  { %62 = dma.hbm_to_vmem [thread:$0]  %s55_s18, 2048, %s57_s0, [#allocation6], %s723_s29, %s723_s29, %s724_s30  }
  0x11   :  { %s728_s27 = smov [#allocation10]   ;;  %s729_s13 = smov [#allocation11]  }
  0x12   :  { %s86_s28 = sshll.u32 %s728_s27, 4  ;;  %s101_s6 = sshll.u32 %s729_s13, 4  ;;  %s87_s28 = int_to_ptr.vmem [resolvable:$true] %s86_s28  ;;  %s102_s6 = int_to_ptr.vmem [resolvable:$true] %s101_s6 }
  0x13   :  { %92 = dma.hbm_to_vmem [thread:$0]  %s85_s24, 2048, %s87_s28, [#allocation9], %s723_s29, %s723_s29, %s724_s30  }
  0x14   :  { %107 = dma.hbm_to_vmem [thread:$0]  %s100_s26, 2048, %s102_s6, [#allocation12], %s723_s29, %s723_s29, %s724_s30  }
  0x15   :  { %710 = dma.done.wait [#allocation3], 256  }
  0x16   :  { %711 = vsyncadd [#allocation3], 4294967040 }
  0x17   :  { %712 = dma.done.wait [#allocation6], 2304  }
  0x18   :  { %713 = vsyncadd [#allocation6], 4294964992 }
  0x19   :  { %714 = dma.done.wait [#allocation9], 4096  }
  0x1a   :  { %715 = vsyncadd [#allocation9], 4294963200 }
  0x1b   :  { %716 = dma.done.wait [#allocation12], 2048  }
  0x1c   :  { %717 = vsyncadd [#allocation12], 4294965248  ;;  %v151_v0 = vld [vmem:[#allocation7 + $0x78] sm:$0xff]  ;;  %v150_v1 = vld [vmem:[#allocation7 + $0x70] sm:$0xff]  ;;  %v343_v36 = vlaneseq  ;;  %vm348_vm3 = vcmask 130048   ;;  %s418_s4 = sshll.u32 %s902_s10, 4  ;;  %s419_s4 = int_to_ptr.hbm [resolvable:$true] %s418_s4 }
  0x1d   :  { %156 = vmatpush.msra.mxu0 %v151_v0  ;;  %v149_v2 = vld [vmem:[#allocation7 + $0x68] sm:$0xff]  ;;  %v148_v3 = vld [vmem:[#allocation7 + $0x60] sm:$0xff]  ;;  %v147_v4 = vld [vmem:[#allocation7 + $0x58] sm:$0xff]  ;;  %s730_s17 = smov [#allocation13]   ;;  %s731_s10 = smov [#allocation14]  }
  0x1e   :  { %v146_v5 = vld [vmem:[#allocation7 + $0x50] sm:$0xff]  ;;  %v145_v6 = vld [vmem:[#allocation7 + $0x48] sm:$0xff]  ;;  %v144_v7 = vld [vmem:[#allocation7 + $0x40] sm:$0xff]  ;;  %v834_v37 = vand.u32 127, %v343_v36  ;;  %v836_v38 = vshrl.u32 %v343_v36, 7  ;;  %s416_s18 = sshll.u32 %s730_s17, 4  ;;  %s417_s18 = int_to_ptr.vmem [resolvable:$true] %s416_s18 }
  0x1f   :  { %157 = vmatpush.msra.mxu0 %v150_v1  ;;  %v143_v8 = vld [vmem:[#allocation7 + $0x38] sm:$0xff]  ;;  %v142_v9 = vld [vmem:[#allocation7 + $0x30] sm:$0xff]  ;;  %v141_v12 = vld [vmem:[#allocation7 + $0x28] sm:$0xff]  ;;  %s429_s21 = sshll.u32 %s731_s10, 4  ;;  %s732_s23 = smov [#allocation16]   ;;  %s430_s21 = int_to_ptr.vmem [resolvable:$true] %s429_s21 }
  0x20   :  { %v196_v10 = vld [vmem:[#allocation8 + $0x78] sm:$0xff]  ;;  %v195_v11 = vld [vmem:[#allocation8 + $0x70] sm:$0xff]  ;;  %v194_v13 = vld [vmem:[#allocation8 + $0x68] sm:$0xff]  ;;  %v839_v39 = vadd.s32 8, %v836_v38  ;;  %vm404_vm0 = vcmp.eq.s32.totalorder %v836_v38, %v834_v37  ;;  %vm345_vm2 = vcmp.lt.s32.totalorder %v834_v37, 8  ;;  %s442_s24 = sshll.u32 %s732_s23, 4  ;;  %s443_s24 = int_to_ptr.vmem [resolvable:$true] %s442_s24 }
  0x21   :  { %158 = vmatpush.msra.mxu0 %v149_v2  ;;  %201 = vmatpush.msra.mxu1 %v196_v10  ;;  %v140_v14 = vld [vmem:[#allocation7 + $0x20] sm:$0xff]  ;;  %v139_v16 = vld [vmem:[#allocation7 + $0x18] sm:$0xff]  ;;  %v138_v18 = vld [vmem:[#allocation7 + $0x10] sm:$0xff]  ;;  %s444_s26 = sshll.u32 %s904_s12, 4  ;;  %s445_s26 = int_to_ptr.hbm [resolvable:$true] %s444_s26 }
  0x22   :  { %v193_v15 = vld [vmem:[#allocation8 + $0x60] sm:$0xff]  ;;  %v192_v17 = vld [vmem:[#allocation8 + $0x58] sm:$0xff]  ;;  %v191_v19 = vld [vmem:[#allocation8 + $0x50] sm:$0xff]  ;;  %vm405_vm1 = vcmp.eq.s32.totalorder %v839_v39, %v834_v37 }
  0x23   :  { %159 = vmatpush.msra.mxu0 %v148_v3  ;;  %202 = vmatpush.msra.mxu1 %v195_v11  ;;  %v137_v20 = vld [vmem:[#allocation7 + $0x8] sm:$0xff]  ;;  %v136_v22 = vld [vmem:[#allocation7] sm:$0xff]  ;;  %v319_v25 = vld [vmem:[#allocation5 + $0x8] sm:$0xff] }
  0x24   :  { %v190_v21 = vld [vmem:[#allocation8 + $0x48] sm:$0xff]  ;;  %v189_v23 = vld [vmem:[#allocation8 + $0x40] sm:$0xff]  ;;  %v188_v26 = vld [vmem:[#allocation8 + $0x38] sm:$0xff] }
  0x25   :  { %160 = vmatpush.msra.mxu0 %v147_v4  ;;  %203 = vmatpush.msra.mxu1 %v194_v13  ;;  %v134_v24 = vld [vmem:[#allocation2] sm:$0xff]  ;;  %v187_v27 = vld [vmem:[#allocation8 + $0x30] sm:$0xff]  ;;  %v186_v29 = vld [vmem:[#allocation8 + $0x28] sm:$0xff] }
  0x26   :  { %v318_v28 = vld [vmem:[#allocation5] sm:$0xff]  ;;  %v185_v30 = vld [vmem:[#allocation8 + $0x20] sm:$0xff]  ;;  %v135_v31 = vld [vmem:[#allocation2 + $0x8] sm:$0xff] }
  0x27   :  { %161 = vmatpush.msra.mxu0 %v146_v5  ;;  %204 = vmatpush.msra.mxu1 %v193_v15  ;;  %v184_v32 = vld [vmem:[#allocation8 + $0x18] sm:$0xff]  ;;  %v183_v33 = vld [vmem:[#allocation8 + $0x10] sm:$0xff]  ;;  %v182_v34 = vld [vmem:[#allocation8 + $0x8] sm:$0xff] }
  0x28   :  { %v181_v35 = vld [vmem:[#allocation8] sm:$0xff]  ;;  %v243_v40 = vld [vmem:[#allocation10 + $0x78] sm:$0xff]  ;;  %v242_v41 = vld [vmem:[#allocation10 + $0x70] sm:$0xff] }
  0x29   :  { %162 = vmatpush.msra.mxu0 %v145_v6  ;;  %205 = vmatpush.msra.mxu1 %v192_v17  ;;  %v241_v42 = vld [vmem:[#allocation10 + $0x68] sm:$0xff]  ;;  %v240_v43 = vld [vmem:[#allocation10 + $0x60] sm:$0xff]  ;;  %v239_v44 = vld [vmem:[#allocation10 + $0x58] sm:$0xff] }
  0x2a   :  { %248 = vmatpush.msra.mxu2 %v243_v40  ;;  %v482_v45 = vld [vmem:[%s895_s3] ss:$0 sm:$0xff]  ;;  %v238_v46 = vld [vmem:[#allocation10 + $0x50] sm:$0xff]  ;;  %v237_v47 = vld [vmem:[#allocation10 + $0x48] sm:$0xff] }
  0x2b   :  { %163 = vmatpush.msra.mxu0 %v144_v7  ;;  %206 = vmatpush.msra.mxu1 %v191_v19  ;;  %v236_v50 = vld [vmem:[#allocation10 + $0x40] sm:$0xff]  ;;  %v235_v52 = vld [vmem:[#allocation10 + $0x38] sm:$0xff]  ;;  %v234_v53 = vld [vmem:[#allocation10 + $0x30] sm:$0xff] }
  0x2c   :  { %249 = vmatpush.msra.mxu2 %v242_v41  ;;  %v233_v54 = vld [vmem:[#allocation10 + $0x28] sm:$0xff]  ;;  %v232_v57 = vld [vmem:[#allocation10 + $0x20] sm:$0xff]  ;;  %v231_v59 = vld [vmem:[#allocation10 + $0x18] sm:$0xff] }
  0x2d   :  { %164 = vmatpush.msra.mxu0 %v143_v8  ;;  %207 = vmatpush.msra.mxu1 %v190_v21  ;;  %v230_v63 = vld [vmem:[#allocation10 + $0x10] sm:$0xff]  ;;  %v229_v0 = vld [vmem:[#allocation10 + $0x8] sm:$0xff]  ;;  %v228_v1 = vld [vmem:[#allocation10] sm:$0xff] }
  0x2e   :  { %250 = vmatpush.msra.mxu2 %v241_v42  ;;  %v288_v2 = vld [vmem:[#allocation11 + $0x78] sm:$0xff]  ;;  %v287_v3 = vld [vmem:[#allocation11 + $0x70] sm:$0xff]  ;;  %v286_v4 = vld [vmem:[#allocation11 + $0x68] sm:$0xff] }
  0x2f   :  { %165 = vmatpush.msra.mxu0 %v142_v9  ;;  %208 = vmatpush.msra.mxu1 %v189_v23  ;;  %v285_v5 = vld [vmem:[#allocation11 + $0x60] sm:$0xff]  ;;  %v284_v6 = vld [vmem:[#allocation11 + $0x58] sm:$0xff]  ;;  %v283_v7 = vld [vmem:[#allocation11 + $0x50] sm:$0xff] }
  0x30   :  { %251 = vmatpush.msra.mxu2 %v240_v43  ;;  %293 = vmatpush.msra.mxu3 %v288_v2  ;;  %v483_v8 = vld [vmem:[%s897_s5] ss:$0 sm:$0xff]  ;;  %v282_v9 = vld [vmem:[#allocation11 + $0x48] sm:$0xff]  ;;  %v280_v13 = vld [vmem:[#allocation11 + $0x38] sm:$0xff] }
  0x31   :  { %166 = vmatpush.msra.mxu0 %v141_v12  ;;  %209 = vmatpush.msra.mxu1 %v188_v26  ;;  %v281_v10 = vld [vmem:[#allocation11 + $0x40] sm:$0xff]  ;;  %v279_v15 = vld [vmem:[#allocation11 + $0x30] sm:$0xff] }
  0x32   :  { %252 = vmatpush.msra.mxu2 %v239_v44  ;;  %294 = vmatpush.msra.mxu3 %v287_v3  ;;  %v485_v38 = vld [vmem:[%s901_s9] ss:$0 sm:$0xff]  ;;  %s431_s9 = sshll.u32 %s903_s11, 4  ;;  %s432_s9 = int_to_ptr.hbm [resolvable:$true] %s431_s9 }
  0x33   :  { %167 = vmatpush.msra.mxu0 %v140_v14  ;;  %210 = vmatpush.msra.mxu1 %v187_v27 }
  0x34   :  { %253 = vmatpush.msra.mxu2 %v238_v46  ;;  %295 = vmatpush.msra.mxu3 %v286_v4 }
  0x35   :  { %168 = vmatpush.msra.mxu0 %v139_v16  ;;  %211 = vmatpush.msra.mxu1 %v186_v29  ;;  %v276_v29 = vld [vmem:[#allocation11 + $0x18] sm:$0xff] }
  0x36   :  { %254 = vmatpush.msra.mxu2 %v237_v47  ;;  %296 = vmatpush.msra.mxu3 %v285_v5 }
  0x37   :  { %169 = vmatpush.msra.mxu0 %v138_v18  ;;  %212 = vmatpush.msra.mxu1 %v185_v30  ;;  %v278_v18 = vld [vmem:[#allocation11 + $0x28] sm:$0xff]  ;;  %v275_v30 = vld [vmem:[#allocation11 + $0x10] sm:$0xff] }
  0x38   :  { %255 = vmatpush.msra.mxu2 %v236_v50  ;;  %297 = vmatpush.msra.mxu3 %v284_v6 }
  0x39   :  { %170 = vmatpush.msra.mxu0 %v137_v20  ;;  %213 = vmatpush.msra.mxu1 %v184_v32  ;;  %v277_v20 = vld [vmem:[#allocation11 + $0x20] sm:$0xff] }
  0x3a   :  { %256 = vmatpush.msra.mxu2 %v235_v52  ;;  %298 = vmatpush.msra.mxu3 %v283_v7  ;;  %v273_v32 = vld [vmem:[#allocation11] sm:$0xff] }
  0x3b   :  { %171 = vmatpush.msra.mxu0 %v136_v22  ;;  %214 = vmatpush.msra.mxu1 %v183_v33 }
  0x3c   :  { %172 = vmatmul.f32.vlgmr.msra.gmra.mxu0 %v134_v24  ;;  %257 = vmatpush.msra.mxu2 %v234_v53 }
  0x3d   :  { %334 = vmatpush.xpose.msrb.mxu0 %v319_v25  ;;  %215 = vmatpush.msra.mxu1 %v182_v34  ;;  %v484_v34 = vld [vmem:[%s899_s7] ss:$0 sm:$0xff] }
  0x3e   :  { %258 = vmatpush.msra.mxu2 %v233_v54  ;;  %299 = vmatpush.msra.mxu3 %v282_v9 }
  0x3f   :  { %216 = vmatpush.msra.mxu1 %v181_v35 }
  0x40   :  { %259 = vmatpush.msra.mxu2 %v232_v57  ;;  %300 = vmatpush.msra.mxu3 %v281_v10 }
  0x41   :  { %335 = vmatpush.xpose.msrb.mxu0 %v318_v28  ;;  %469 = vmatpush.xpose.msrb.mxu1 %v319_v25 }
  0x42   :  { %260 = vmatpush.msra.mxu2 %v231_v59  ;;  %301 = vmatpush.msra.mxu3 %v280_v13 }
  0x44   :  { %175 = vmatmul.f32.gmra.mxu0 %v135_v31  ;;  %261 = vmatpush.msra.mxu2 %v230_v63 }
  0x45   :  { %470 = vmatpush.xpose.msrb.mxu1 %v318_v28  ;;  %302 = vmatpush.msra.mxu3 %v279_v15 }
  0x46   :  { %262 = vmatpush.msra.mxu2 %v229_v0 }
  0x47   :  { %303 = vmatpush.msra.mxu3 %v278_v18 }
  0x48   :  { %263 = vmatpush.msra.mxu2 %v228_v1 }
  0x49   :  { %304 = vmatpush.msra.mxu3 %v277_v20 }
  0x4b   :  { %305 = vmatpush.msra.mxu3 %v276_v29 }
  0x4c   :  { %336 = vmatmul.f32.vlgmr.msrb.gmra.mxu0 %v134_v24 }
  0x4d   :  { %306 = vmatpush.msra.mxu3 %v275_v30 }
  0xb9   :  { %v173_v48 = vpop.f32.mrf.mxu0 }
  0xba   :  { %v174_v49 = vadd.f32 %v482_v45, %v173_v48 }
  0xbc   :  { %v179_v51 = vmax.f32 %v174_v49, 0.0 }
  0xbe   :  { %217 = vmatmul.f32.vlgmr.msra.gmra.mxu1 %v179_v51 }
  0xc1   :  { %v176_v55 = vpop.f32.mrf.mxu0 }
  0xc2   :  { %v177_v56 = vadd.f32 %v482_v45, %v176_v55 }
  0xc4   :  { %v180_v58 = vmax.f32 %v177_v56, 0.0 }
  0xc6   :  { %220 = vmatmul.f32.gmra.mxu1 %v180_v58 }
  0xc9   :  { %v337_v60 = vpop.f32.mrf.mxu0 }
  0xca   :  { %v346_v61 = vsel %vm345_vm2, %v337_v60, -1e+30 }
  0xcb   :  { %v349_v62 = vsel %vm348_vm3, %v346_v61, -inf }
  0xcc   :  { %350 = vmax.xlane.f32.xlu0 %v349_v62 }
  0xce   :  { %339 = vmatmul.f32.vlgmr.msrb.gmra.mxu1 %v135_v31  ;;  %v274_v31 = vld [vmem:[#allocation11 + $0x8] sm:$0xff] }
  0xcf   :  { %307 = vmatpush.msra.mxu3 %v274_v31 }
  0xd1   :  { %308 = vmatpush.msra.mxu3 %v273_v32 }
 0x13b   :  { %v218_v11 = vpop.f32.mrf.mxu1 }
 0x13c   :  { %v219_v12 = vadd.f32 %v483_v8, %v218_v11 }
 0x13e   :  { %v224_v14 = vmax.f32 %v219_v12, 0.0 }
 0x13f   :  { %v351_v16 = vpop.xlane.xlu0 %350 }
 0x140   :  { %226 = vst [vmem:[#allocation13] sm:$0xff] %v224_v14  ;;  %v355_v17 = vsub.f32 %v346_v61, %v351_v16  ;;  %264 = vmatmul.f32.vlgmr.msra.gmra.mxu2 %v224_v14 }
 0x142   :  { %v357_v19 = vmul.f32 1.442695, %v355_v17 }
 0x143   :  { %v221_v21 = vpop.f32.mrf.mxu1 }
 0x144   :  { %486 = vpow2.f32 %v357_v19  ;;  %v222_v22 = vadd.f32 %v483_v8, %v221_v21 }
 0x146   :  { %v225_v23 = vmax.f32 %v222_v22, 0.0 }
 0x148   :  { %227 = vst [vmem:[#allocation13 + $0x8] sm:$0xff] %v225_v23  ;;  %267 = vmatmul.f32.gmra.mxu2 %v225_v23 }
 0x149   :  { %424 = dma.vmem_to_hbm [thread:$0]  %s417_s18, 256, %s419_s4, [#allocation4], %s723_s29, %s723_s29, %s724_s30  }
 0x14a   :  { %v487_v24 = vpop.eup %486 }
 0x14b   :  { %v340_v25 = vpop.f32.mrf.mxu1  ;;  %v361_v26 = vsel %vm348_vm3, %v487_v24, 0.0 }
 0x14c   :  { %v347_v27 = vsel %vm345_vm2, %v340_v25, -1e+30  ;;  %362 = vadd.xlane.f32.xlu1 %v361_v26 }
 0x14d   :  { %v352_v28 = vsel %vm348_vm3, %v347_v27, -inf }
 0x14e   :  { %353 = vmax.xlane.f32.xlu0 %v352_v28 }
 0x1bf   :  { %v363_v33 = vpop.xlane.xlu1 %362 }
 0x1c0   :  { %488 = vrcp.f32 %v363_v33  ;;  %v378_v47 = vand.u32 2147483648, %v363_v33  ;;  %v376_v49 = vand.u32 2147483647, %v363_v33  ;;  %vm372_vm5 = vweird.f32 %v363_v33 }
 0x1c1   :  { %v354_v35 = vpop.xlane.xlu0 %353 }
 0x1c2   :  { %v356_v36 = vsub.f32 %v347_v27, %v354_v35  ;;  %v379_v55 = vor.u32 1.1754944e-38, %v378_v47  ;;  %vm377_vm7 = vcmp.eq.f32.partialorder %v376_v49, 8.507059e+37 }
 0x1c3   :  { %v265_v40 = vpop.f32.mrf.mxu2 }
 0x1c4   :  { %v359_v41 = vmul.f32 1.442695, %v356_v36  ;;  %v266_v42 = vadd.f32 %v484_v34, %v265_v40 }
 0x1c6   :  { %v489_v43 = vpop.eup %488  ;;  %490 = vpow2.f32 %v359_v41  ;;  %v271_v44 = vmax.f32 %v266_v42, 0.0 }
 0x1c7   :  { %v368_v45 = vmul.f32 %v489_v43, %v363_v33  ;;  %vm373_vm4 = vweird.f32 %v489_v43 }
 0x1c8   :  { %309 = vmatmul.f32.vlgmr.msra.gmra.mxu3 %v271_v44  ;;  %vm374_vm6 = vmor %vm372_vm5, %vm373_vm4 }
 0x1c9   :  { %v369_v46 = vsub.f32 1.0, %v368_v45 }
 0x1cb   :  { %v370_v48 = vmul.f32 %v489_v43, %v369_v46  ;;  %v268_v50 = vpop.f32.mrf.mxu2 }
 0x1cc   :  { %v491_v51 = vpop.eup %490  ;;  %v269_v52 = vadd.f32 %v484_v34, %v268_v50 }
 0x1cd   :  { %v371_v53 = vadd.f32 %v489_v43, %v370_v48  ;;  %v364_v54 = vsel %vm348_vm3, %v491_v51, 0.0 }
 0x1ce   :  { %v272_v56 = vmax.f32 %v269_v52, 0.0  ;;  %365 = vadd.xlane.f32.xlu1 %v364_v54 }
 0x1cf   :  { %v375_v57 = vsel %vm374_vm6, %v489_v43, %v371_v53 }
 0x1d0   :  { %v380_v58 = vsel %vm377_vm7, %v379_v55, %v375_v57  ;;  %312 = vmatmul.f32.gmra.mxu3 %v272_v56 }
 0x1d1   :  { %v395_v59 = vmul.f32 %v487_v24, %v380_v58 }
 0x1d3   :  { %v406_v60 = vadd.f32 1.0, %v395_v59 }
 0x1d5   :  { %v408_v61 = vsel %vm404_vm0, %v406_v60, %v395_v59 }
 0x1d6   :  { %410 = vst.msk [vmem:[#allocation16] sm:$0xff] %vm348_vm3, %v408_v61 }
 0x241   :  { %v366_v62 = vpop.xlane.xlu1 %365 }
 0x242   :  { %492 = vrcp.f32 %v366_v62  ;;  %v392_v3 = vand.u32 2147483648, %v366_v62  ;;  %v390_v6 = vand.u32 2147483647, %v366_v62  ;;  %vm386_vm9 = vweird.f32 %v366_v62 }
 0x244   :  { %v393_v8 = vor.u32 1.1754944e-38, %v392_v3  ;;  %vm391_vm11 = vcmp.eq.f32.partialorder %v390_v6, 8.507059e+37 }
 0x248   :  { %v493_v63 = vpop.eup %492 }
 0x249   :  { %v382_v0 = vmul.f32 %v493_v63, %v366_v62  ;;  %vm387_vm8 = vweird.f32 %v493_v63 }
 0x24a   :  { %vm388_vm10 = vmor %vm386_vm9, %vm387_vm8 }
 0x24b   :  { %v383_v1 = vsub.f32 1.0, %v382_v0  ;;  %v310_v2 = vpop.f32.mrf.mxu3 }
 0x24c   :  { %v311_v4 = vadd.f32 %v485_v38, %v310_v2 }
 0x24d   :  { %v384_v5 = vmul.f32 %v493_v63, %v383_v1 }
 0x24e   :  { %316 = vst [vmem:[#allocation14] sm:$0xff] %v311_v4 }
 0x24f   :  { %v385_v7 = vadd.f32 %v493_v63, %v384_v5 }
 0x251   :  { %v389_v9 = vsel %vm388_vm10, %v493_v63, %v385_v7 }
 0x252   :  { %v394_v10 = vsel %vm391_vm11, %v393_v8, %v389_v9 }
 0x253   :  { %v396_v11 = vmul.f32 %v491_v51, %v394_v10  ;;  %v313_v12 = vpop.f32.mrf.mxu3 }
 0x254   :  { %v314_v13 = vadd.f32 %v485_v38, %v313_v12 }
 0x255   :  { %v407_v14 = vadd.f32 1.0, %v396_v11 }
 0x256   :  { %317 = vst [vmem:[#allocation14 + $0x8] sm:$0xff] %v314_v13 }
 0x257   :  { %437 = dma.vmem_to_hbm [thread:$0]  %s430_s21, 256, %s432_s9, [#allocation15], %s723_s29, %s723_s29, %s724_s30   ;;  %v409_v15 = vsel %vm405_vm1, %v407_v14, %v396_v11 }
 0x258   :  { %411 = vst.msk [vmem:[#allocation16 + $0x8] sm:$0xff] %vm348_vm3, %v409_v15 }
 0x259   :  { %450 = dma.vmem_to_hbm [thread:$0]  %s443_s24, 256, %s445_s26, [#allocation15], %s723_s29, %s723_s29, %s724_s30  }
 0x25a   :  { %718 = dma.done.wait [#allocation4], 256  }
 0x25b   :  { %719 = vsyncadd [#allocation4], 4294967040 }
 0x25c   :  { %720 = dma.done.wait [#allocation15], 512  }
 0x25d   :  { %721 = vsyncadd [#allocation15], 4294966784 }
 0x25e   :  { %463 = vsyncpa [#allocation3], 1 }
 0x25f   :  { %464 = vsyncpa [#allocation6], 1 }
 0x260   :  { %465 = vsyncpa [#allocation9], 1 }
 0x261   :  { %466 = vsyncpa [#allocation12], 1 }
 0x262   :  { %467 = vsyncpa [#allocation4], 1 }
 0x263   :  { %468 = vsyncpa [#allocation15], 1 }

</bundles_post_ra>
